<compile_context>
chip_gen: v7x
topology: tpu7x:2x2x1
jax: 0.10.0
libtpu: 0.0.40
codegen_flags: <defaults>
</compile_context>

<pallas_src>
from functools import partial

import numpy as np
import jax
import jax.numpy as jnp
from jax import lax
from jax.experimental import pallas as pl
from jax.experimental.pallas import tpu as pltpu


def convn_kernel(x_ref, w_ref, mask_ref, o_ref, patches_ref, *,
                 N, H, W, KH, KW, C_in, CP, C_out, pad_h, pad_w):
    # x_ref:       (N, C_in, H*W)        lane-dense NC(HW) input (input dtype)
    # w_ref:       (C_out, KH*KW*CP)     bf16 weights, taps flattened, zero-padded cols
    # mask_ref:    (KH*KW, H*W)          int32 per-tap border validity (1 = keep)
    # o_ref:       (N, C_out, H*W)       lane-dense output
    # patches_ref: (KH*KW*CP, N*H*W) f32 VMEM im2col scratch
    HW = H * W

    # Zero ONLY the channel-padding rows (never overwritten below).  Their
    # weight columns are zero, but uninitialized VMEM could hold NaNs and
    # 0 * NaN would poison the f32 accumulation.  Real rows are fully
    # overwritten, so no full-buffer zero-fill.
    if CP > C_in:
        pad_zeros = jnp.zeros((CP - C_in, N * HW), patches_ref.dtype)
        for t in range(KH * KW):
            patches_ref[t * CP + C_in:(t + 1) * CP, :] = pad_zeros

    # Load each image slab once (lane-dense, no relayout).
    xs = [x_ref[n] for n in range(N)]                       # (C_in, HW) each

    # im2col: lane-roll + border mask, tap-major into the scratch.
    for kh in range(KH):
        for kw in range(KW):
            t = kh * KW + kw
            dh, dw = kh - pad_h, kw - pad_w
            shift = (-(dh * W + dw)) % HW      # after roll, lane p holds x[p + d]
            needs_mask = (dh != 0) or (dw != 0)
            if needs_mask:
                m = mask_ref[t:t + 1, :] != 0  # (1, HW) bool, bcast over C_in
            for n in range(N):
                v = xs[n]
                if shift:
                    v = pltpu.roll(v, shift=shift, axis=1)   # XLU lane rotate
                if needs_mask:
                    v = jnp.where(m, v, 0.0)                 # VPU select
                patches_ref[t * CP:t * CP + C_in,
                            n * HW:(n + 1) * HW] = v.astype(patches_ref.dtype)

    # Single deep-K MXU matmul over the whole batch:
    # (C_out, K) x (K, N*HW) -> (C_out, N*HW), bf16 operands, f32 accumulation.
    acc = jnp.dot(w_ref[...], patches_ref[...].astype(jnp.bfloat16),
                  preferred_element_type=jnp.float32)

    for n in range(N):
        o_ref[n] = acc[:, n * HW:(n + 1) * HW].astype(o_ref.dtype)


def convn_block(x_nchw, weight_oihw, *, stride=1, groups=1):
    """Forward of ConvNBlock: Conv2d(k, stride=1, pad=(k-1)//2, bias=False)."""
    assert stride == 1 and groups == 1, "only stride=1, groups=1 implemented"
    N, C_in, H, W = x_nchw.shape
    C_out, C_in_w, KH, KW = weight_oihw.shape
    assert C_in_w == C_in
    assert KH % 2 == 1 and KW % 2 == 1, "odd kernel sizes only (symmetric pad)"
    pad_h, pad_w = (KH - 1) // 2, (KW - 1) // 2     # per-dim (KH != KW safe)
    HW = H * W
    CP = ((C_in + 7) // 8) * 8                      # sublane-aligned tap slab
    K = KH * KW * CP

    # (C_out, C_in, KH, KW) -> (C_out, KH, KW, CP) -> (C_out, K), bf16 once.
    # Contraction order (kh, kw, c) matches the in-kernel patch stacking; the
    # CP - C_in pad columns are zero so they contribute nothing.
    w_flat = jnp.transpose(weight_oihw, (0, 2, 3, 1))
    w_flat = jnp.pad(w_flat, ((0, 0), (0, 0), (0, 0), (0, CP - C_in)))
    w_flat = w_flat.reshape(C_out, K).astype(jnp.bfloat16)

    # Per-tap border-validity masks over the flattened (h, w) lane axis.
    # Compile-time constant, built host-side; ~KH*KW*HW*4 bytes (9 KiB here).
    hs = np.arange(H)[:, None]
    ws = np.arange(W)[None, :]
    mask_np = np.zeros((KH * KW, HW), dtype=np.int32)
    for kh in range(KH):
        for kw in range(KW):
            dh, dw = kh - pad_h, kw - pad_w
            valid = ((hs + dh >= 0) & (hs + dh < H) &
                     (ws + dw >= 0) & (ws + dw < W))
            mask_np[kh * KW + kw] = valid.reshape(-1).astype(np.int32)
    masks = jnp.asarray(mask_np)

    # Lane-dense input view: (N, C_in, H*W) is contiguous => free reshape,
    # one contiguous DMA burst per image (no 64-byte strided rows).
    x_flat = x_nchw.reshape(N, C_in, HW)

    out_flat = pl.pallas_call(
        partial(convn_kernel, N=N, H=H, W=W, KH=KH, KW=KW,
                C_in=C_in, CP=CP, C_out=C_out, pad_h=pad_h, pad_w=pad_w),
        out_shape=jax.ShapeDtypeStruct((N, C_out, HW), x_nchw.dtype),
        grid=(1,),                                  # whole batch in one step
        in_specs=[
            pl.BlockSpec((N, C_in, HW), lambda i: (0, 0, 0)),
            pl.BlockSpec((C_out, K), lambda i: (0, 0)),
            pl.BlockSpec((KH * KW, HW), lambda i: (0, 0)),
        ],
        out_specs=pl.BlockSpec((N, C_out, HW), lambda i: (0, 0, 0)),
        scratch_shapes=[pltpu.VMEM((K, N * HW), jnp.float32)],
        compiler_params=pltpu.CompilerParams(
            dimension_semantics=("arbitrary",)),
    )(x_flat, w_flat, masks)

    # Free (contiguous) reshape back to NCHW — no transpose, no extra HBM pass.
    return out_flat.reshape(N, C_out, H, W)


if __name__ == "__main__":
    key = jax.random.PRNGKey(0)
    kx, kw = jax.random.split(key)

    # Small shapes consistent with the module: NCHW input, OIHW weight.
    N, C_in, H, W = 2, 4, 16, 16
    C_out, Ksz = 8, 3

    x = jax.random.normal(kx, (N, C_in, H, W), dtype=jnp.float32)
    fan_in = C_in * Ksz * Ksz
    weight = jax.random.normal(kw, (C_out, C_in, Ksz, Ksz), dtype=jnp.float32)
    weight = weight * (2.0 / fan_in) ** 0.5

    out = convn_block(x, weight)
    out = jax.block_until_ready(out)
    assert out.shape == (N, C_out, H, W)

    # Reference 1: same precision recipe (bf16 operands, f32 accumulation).
    ref_bf16 = lax.conv_general_dilated(
        x.astype(jnp.bfloat16), weight.astype(jnp.bfloat16),
        window_strides=(1, 1), padding=((1, 1), (1, 1)),
        dimension_numbers=("NCHW", "OIHW", "NCHW"),
        preferred_element_type=jnp.float32)
    assert jnp.allclose(out, ref_bf16, atol=1e-2, rtol=1e-2)

    # Reference 2: full-f32 conv (nn.Conv2d semantics); loose tol for bf16 MXU.
    ref_f32 = lax.conv_general_dilated(
        x, weight, window_strides=(1, 1), padding=((1, 1), (1, 1)),
        dimension_numbers=("NCHW", "OIHW", "NCHW"))
    assert jnp.allclose(out, ref_f32, atol=5e-2, rtol=5e-2)

    print("KERNEL_OK")
</pallas_src>

<mosaic_0001>
module attributes {stable_mosaic.version = 11 : i64} {
  func.func @convn_kernel(%arg0: i32, %arg1: memref<2x4x256xf32, #tpu.memory_space<vmem>>, %arg2: memref<8x72xbf16, #tpu.memory_space<vmem>>, %arg3: memref<9x256xi32, #tpu.memory_space<vmem>>, %arg4: memref<2x8x256xf32, #tpu.memory_space<vmem>>, %arg5: memref<72x512xf32, #tpu.memory_space<vmem>>) attributes {dimension_semantics = [#tpu.dimension_semantics<arbitrary>], iteration_bounds = array<i64: 1>, scalar_prefetch = 0 : i64, scratch_operands = 1 : i64, tpu.core_type = #tpu.core_type<tc>, window_params = [{pipeline_mode = #tpu.pipeline_mode<synchronous>, transform_indices = @transform_0, window_bounds = array<i64: 2, 4, 256>}, {pipeline_mode = #tpu.pipeline_mode<synchronous>, transform_indices = @transform_1, window_bounds = array<i64: 8, 72>}, {pipeline_mode = #tpu.pipeline_mode<synchronous>, transform_indices = @transform_2, window_bounds = array<i64: 9, 256>}, {pipeline_mode = #tpu.pipeline_mode<synchronous>, transform_indices = @transform_3, window_bounds = array<i64: 2, 8, 256>}]} {
    %cst = arith.constant 0.000000e+00 : f32
    %0 = vector.broadcast %cst : f32 to vector<4x512xf32>
    %c4 = arith.constant 4 : index
    %c0 = arith.constant 0 : index
    %1 = vector.load %arg5[%c4, %c0] : memref<72x512xf32, #tpu.memory_space<vmem>>, vector<4x512xf32>
    tpu.vector_store %arg5[%c4, %c0], %0 {strides = array<i32>} : memref<72x512xf32, #tpu.memory_space<vmem>>, vector<4x512xf32>,
    %c12 = arith.constant 12 : index
    %c0_0 = arith.constant 0 : index
    %2 = vector.load %arg5[%c12, %c0_0] : memref<72x512xf32, #tpu.memory_space<vmem>>, vector<4x512xf32>
    tpu.vector_store %arg5[%c12, %c0_0], %0 {strides = array<i32>} : memref<72x512xf32, #tpu.memory_space<vmem>>, vector<4x512xf32>,
    %c20 = arith.constant 20 : index
    %c0_1 = arith.constant 0 : index
    %3 = vector.load %arg5[%c20, %c0_1] : memref<72x512xf32, #tpu.memory_space<vmem>>, vector<4x512xf32>
    tpu.vector_store %arg5[%c20, %c0_1], %0 {strides = array<i32>} : memref<72x512xf32, #tpu.memory_space<vmem>>, vector<4x512xf32>,
    %c28 = arith.constant 28 : index
    %c0_2 = arith.constant 0 : index
    %4 = vector.load %arg5[%c28, %c0_2] : memref<72x512xf32, #tpu.memory_space<vmem>>, vector<4x512xf32>
    tpu.vector_store %arg5[%c28, %c0_2], %0 {strides = array<i32>} : memref<72x512xf32, #tpu.memory_space<vmem>>, vector<4x512xf32>,
    %c36 = arith.constant 36 : index
    %c0_3 = arith.constant 0 : index
    %5 = vector.load %arg5[%c36, %c0_3] : memref<72x512xf32, #tpu.memory_space<vmem>>, vector<4x512xf32>
    tpu.vector_store %arg5[%c36, %c0_3], %0 {strides = array<i32>} : memref<72x512xf32, #tpu.memory_space<vmem>>, vector<4x512xf32>,
    %c44 = arith.constant 44 : index
    %c0_4 = arith.constant 0 : index
    %6 = vector.load %arg5[%c44, %c0_4] : memref<72x512xf32, #tpu.memory_space<vmem>>, vector<4x512xf32>
    tpu.vector_store %arg5[%c44, %c0_4], %0 {strides = array<i32>} : memref<72x512xf32, #tpu.memory_space<vmem>>, vector<4x512xf32>,
    %c52 = arith.constant 52 : index
    %c0_5 = arith.constant 0 : index
    %7 = vector.load %arg5[%c52, %c0_5] : memref<72x512xf32, #tpu.memory_space<vmem>>, vector<4x512xf32>
    tpu.vector_store %arg5[%c52, %c0_5], %0 {strides = array<i32>} : memref<72x512xf32, #tpu.memory_space<vmem>>, vector<4x512xf32>,
    %c60 = arith.constant 60 : index
    %c0_6 = arith.constant 0 : index
    %8 = vector.load %arg5[%c60, %c0_6] : memref<72x512xf32, #tpu.memory_space<vmem>>, vector<4x512xf32>
    tpu.vector_store %arg5[%c60, %c0_6], %0 {strides = array<i32>} : memref<72x512xf32, #tpu.memory_space<vmem>>, vector<4x512xf32>,
    %c68 = arith.constant 68 : index
    %c0_7 = arith.constant 0 : index
    %9 = vector.load %arg5[%c68, %c0_7] : memref<72x512xf32, #tpu.memory_space<vmem>>, vector<4x512xf32>
    tpu.vector_store %arg5[%c68, %c0_7], %0 {strides = array<i32>} : memref<72x512xf32, #tpu.memory_space<vmem>>, vector<4x512xf32>,
    %c0_8 = arith.constant 0 : index
    %c0_9 = arith.constant 0 : index
    %c0_10 = arith.constant 0 : index
    %10 = vector.load %arg1[%c0_8, %c0_9, %c0_10] : memref<2x4x256xf32, #tpu.memory_space<vmem>>, vector<1x4x256xf32>
    %11 = vector.shape_cast %10 : vector<1x4x256xf32> to vector<4x256xf32>
    %c1 = arith.constant 1 : index
    %c0_11 = arith.constant 0 : index
    %c0_12 = arith.constant 0 : index
    %12 = vector.load %arg1[%c1, %c0_11, %c0_12] : memref<2x4x256xf32, #tpu.memory_space<vmem>>, vector<1x4x256xf32>
    %13 = vector.shape_cast %12 : vector<1x4x256xf32> to vector<4x256xf32>
    %c0_13 = arith.constant 0 : index
    %c0_14 = arith.constant 0 : index
    %14 = vector.load %arg3[%c0_13, %c0_14] : memref<9x256xi32, #tpu.memory_space<vmem>>, vector<1x256xi32>
    %c0_i32 = arith.constant 0 : i32
    %15 = vector.broadcast %c0_i32 : i32 to vector<1x256xi32>
    %16 = arith.cmpi ne, %14, %15 : vector<1x256xi32>
    %c17_i32 = arith.constant 17 : i32
    %17 = tpu.dynamic_rotate %11 by %c17_i32 dim 1 : vector<4x256xf32>, i32 -> vector<4x256xf32>
    %cst_15 = arith.constant 0.000000e+00 : f32
    %18 = vector.shape_cast %16 : vector<1x256xi1> to vector<1x256xi1>
    %19 = vector.broadcast %18 : vector<1x256xi1> to vector<4x256xi1>
    %20 = vector.broadcast %cst_15 : f32 to vector<4x256xf32>
    %21 = arith.select %19, %17, %20 : vector<4x256xi1>, vector<4x256xf32>
    %c0_16 = arith.constant 0 : index
    %c0_17 = arith.constant 0 : index
    %22 = vector.load %arg5[%c0_16, %c0_17] : memref<72x512xf32, #tpu.memory_space<vmem>>, vector<4x256xf32>
    tpu.vector_store %arg5[%c0_16, %c0_17], %21 {strides = array<i32>} : memref<72x512xf32, #tpu.memory_space<vmem>>, vector<4x256xf32>,
    %c17_i32_18 = arith.constant 17 : i32
    %23 = tpu.dynamic_rotate %13 by %c17_i32_18 dim 1 : vector<4x256xf32>, i32 -> vector<4x256xf32>
    %cst_19 = arith.constant 0.000000e+00 : f32
    %24 = vector.shape_cast %16 : vector<1x256xi1> to vector<1x256xi1>
    %25 = vector.broadcast %24 : vector<1x256xi1> to vector<4x256xi1>
    %26 = vector.broadcast %cst_19 : f32 to vector<4x256xf32>
    %27 = arith.select %25, %23, %26 : vector<4x256xi1>, vector<4x256xf32>
    %c0_20 = arith.constant 0 : index
    %c256 = arith.constant 256 : index
    %28 = vector.load %arg5[%c0_20, %c256] : memref<72x512xf32, #tpu.memory_space<vmem>>, vector<4x256xf32>
    tpu.vector_store %arg5[%c0_20, %c256], %27 {strides = array<i32>} : memref<72x512xf32, #tpu.memory_space<vmem>>, vector<4x256xf32>,
    %c1_21 = arith.constant 1 : index
    %c0_22 = arith.constant 0 : index
    %29 = vector.load %arg3[%c1_21, %c0_22] : memref<9x256xi32, #tpu.memory_space<vmem>>, vector<1x256xi32>
    %c0_i32_23 = arith.constant 0 : i32
    %30 = vector.broadcast %c0_i32_23 : i32 to vector<1x256xi32>
    %31 = arith.cmpi ne, %29, %30 : vector<1x256xi32>
    %c16_i32 = arith.constant 16 : i32
    %32 = tpu.dynamic_rotate %11 by %c16_i32 dim 1 : vector<4x256xf32>, i32 -> vector<4x256xf32>
    %cst_24 = arith.constant 0.000000e+00 : f32
    %33 = vector.shape_cast %31 : vector<1x256xi1> to vector<1x256xi1>
    %34 = vector.broadcast %33 : vector<1x256xi1> to vector<4x256xi1>
    %35 = vector.broadcast %cst_24 : f32 to vector<4x256xf32>
    %36 = arith.select %34, %32, %35 : vector<4x256xi1>, vector<4x256xf32>
    %c8 = arith.constant 8 : index
    %c0_25 = arith.constant 0 : index
    %37 = vector.load %arg5[%c8, %c0_25] : memref<72x512xf32, #tpu.memory_space<vmem>>, vector<4x256xf32>
    tpu.vector_store %arg5[%c8, %c0_25], %36 {strides = array<i32>} : memref<72x512xf32, #tpu.memory_space<vmem>>, vector<4x256xf32>,
    %c16_i32_26 = arith.constant 16 : i32
    %38 = tpu.dynamic_rotate %13 by %c16_i32_26 dim 1 : vector<4x256xf32>, i32 -> vector<4x256xf32>
    %cst_27 = arith.constant 0.000000e+00 : f32
    %39 = vector.shape_cast %31 : vector<1x256xi1> to vector<1x256xi1>
    %40 = vector.broadcast %39 : vector<1x256xi1> to vector<4x256xi1>
    %41 = vector.broadcast %cst_27 : f32 to vector<4x256xf32>
    %42 = arith.select %40, %38, %41 : vector<4x256xi1>, vector<4x256xf32>
    %c8_28 = arith.constant 8 : index
    %c256_29 = arith.constant 256 : index
    %43 = vector.load %arg5[%c8_28, %c256_29] : memref<72x512xf32, #tpu.memory_space<vmem>>, vector<4x256xf32>
    tpu.vector_store %arg5[%c8_28, %c256_29], %42 {strides = array<i32>} : memref<72x512xf32, #tpu.memory_space<vmem>>, vector<4x256xf32>,
    %c2 = arith.constant 2 : index
    %c0_30 = arith.constant 0 : index
    %44 = vector.load %arg3[%c2, %c0_30] : memref<9x256xi32, #tpu.memory_space<vmem>>, vector<1x256xi32>
    %c0_i32_31 = arith.constant 0 : i32
    %45 = vector.broadcast %c0_i32_31 : i32 to vector<1x256xi32>
    %46 = arith.cmpi ne, %44, %45 : vector<1x256xi32>
    %c15_i32 = arith.constant 15 : i32
    %47 = tpu.dynamic_rotate %11 by %c15_i32 dim 1 : vector<4x256xf32>, i32 -> vector<4x256xf32>
    %cst_32 = arith.constant 0.000000e+00 : f32
    %48 = vector.shape_cast %46 : vector<1x256xi1> to vector<1x256xi1>
    %49 = vector.broadcast %48 : vector<1x256xi1> to vector<4x256xi1>
    %50 = vector.broadcast %cst_32 : f32 to vector<4x256xf32>
    %51 = arith.select %49, %47, %50 : vector<4x256xi1>, vector<4x256xf32>
    %c16 = arith.constant 16 : index
    %c0_33 = arith.constant 0 : index
    %52 = vector.load %arg5[%c16, %c0_33] : memref<72x512xf32, #tpu.memory_space<vmem>>, vector<4x256xf32>
    tpu.vector_store %arg5[%c16, %c0_33], %51 {strides = array<i32>} : memref<72x512xf32, #tpu.memory_space<vmem>>, vector<4x256xf32>,
    %c15_i32_34 = arith.constant 15 : i32
    %53 = tpu.dynamic_rotate %13 by %c15_i32_34 dim 1 : vector<4x256xf32>, i32 -> vector<4x256xf32>
    %cst_35 = arith.constant 0.000000e+00 : f32
    %54 = vector.shape_cast %46 : vector<1x256xi1> to vector<1x256xi1>
    %55 = vector.broadcast %54 : vector<1x256xi1> to vector<4x256xi1>
    %56 = vector.broadcast %cst_35 : f32 to vector<4x256xf32>
    %57 = arith.select %55, %53, %56 : vector<4x256xi1>, vector<4x256xf32>
    %c16_36 = arith.constant 16 : index
    %c256_37 = arith.constant 256 : index
    %58 = vector.load %arg5[%c16_36, %c256_37] : memref<72x512xf32, #tpu.memory_space<vmem>>, vector<4x256xf32>
    tpu.vector_store %arg5[%c16_36, %c256_37], %57 {strides = array<i32>} : memref<72x512xf32, #tpu.memory_space<vmem>>, vector<4x256xf32>,
    %c3 = arith.constant 3 : index
    %c0_38 = arith.constant 0 : index
    %59 = vector.load %arg3[%c3, %c0_38] : memref<9x256xi32, #tpu.memory_space<vmem>>, vector<1x256xi32>
    %c0_i32_39 = arith.constant 0 : i32
    %60 = vector.broadcast %c0_i32_39 : i32 to vector<1x256xi32>
    %61 = arith.cmpi ne, %59, %60 : vector<1x256xi32>
    %c1_i32 = arith.constant 1 : i32
    %62 = tpu.dynamic_rotate %11 by %c1_i32 dim 1 : vector<4x256xf32>, i32 -> vector<4x256xf32>
    %cst_40 = arith.constant 0.000000e+00 : f32
    %63 = vector.shape_cast %61 : vector<1x256xi1> to vector<1x256xi1>
    %64 = vector.broadcast %63 : vector<1x256xi1> to vector<4x256xi1>
    %65 = vector.broadcast %cst_40 : f32 to vector<4x256xf32>
    %66 = arith.select %64, %62, %65 : vector<4x256xi1>, vector<4x256xf32>
    %c24 = arith.constant 24 : index
    %c0_41 = arith.constant 0 : index
    %67 = vector.load %arg5[%c24, %c0_41] : memref<72x512xf32, #tpu.memory_space<vmem>>, vector<4x256xf32>
    tpu.vector_store %arg5[%c24, %c0_41], %66 {strides = array<i32>} : memref<72x512xf32, #tpu.memory_space<vmem>>, vector<4x256xf32>,
    %c1_i32_42 = arith.constant 1 : i32
    %68 = tpu.dynamic_rotate %13 by %c1_i32_42 dim 1 : vector<4x256xf32>, i32 -> vector<4x256xf32>
    %cst_43 = arith.constant 0.000000e+00 : f32
    %69 = vector.shape_cast %61 : vector<1x256xi1> to vector<1x256xi1>
    %70 = vector.broadcast %69 : vector<1x256xi1> to vector<4x256xi1>
    %71 = vector.broadcast %cst_43 : f32 to vector<4x256xf32>
    %72 = arith.select %70, %68, %71 : vector<4x256xi1>, vector<4x256xf32>
    %c24_44 = arith.constant 24 : index
    %c256_45 = arith.constant 256 : index
    %73 = vector.load %arg5[%c24_44, %c256_45] : memref<72x512xf32, #tpu.memory_space<vmem>>, vector<4x256xf32>
    tpu.vector_store %arg5[%c24_44, %c256_45], %72 {strides = array<i32>} : memref<72x512xf32, #tpu.memory_space<vmem>>, vector<4x256xf32>,
    %c32 = arith.constant 32 : index
    %c0_46 = arith.constant 0 : index
    %74 = vector.load %arg5[%c32, %c0_46] : memref<72x512xf32, #tpu.memory_space<vmem>>, vector<4x256xf32>
    tpu.vector_store %arg5[%c32, %c0_46], %11 {strides = array<i32>} : memref<72x512xf32, #tpu.memory_space<vmem>>, vector<4x256xf32>,
    %c32_47 = arith.constant 32 : index
    %c256_48 = arith.constant 256 : index
    %75 = vector.load %arg5[%c32_47, %c256_48] : memref<72x512xf32, #tpu.memory_space<vmem>>, vector<4x256xf32>
    tpu.vector_store %arg5[%c32_47, %c256_48], %13 {strides = array<i32>} : memref<72x512xf32, #tpu.memory_space<vmem>>, vector<4x256xf32>,
    %c5 = arith.constant 5 : index
    %c0_49 = arith.constant 0 : index
    %76 = vector.load %arg3[%c5, %c0_49] : memref<9x256xi32, #tpu.memory_space<vmem>>, vector<1x256xi32>
    %c0_i32_50 = arith.constant 0 : i32
    %77 = vector.broadcast %c0_i32_50 : i32 to vector<1x256xi32>
    %78 = arith.cmpi ne, %76, %77 : vector<1x256xi32>
    %c255_i32 = arith.constant 255 : i32
    %79 = tpu.dynamic_rotate %11 by %c255_i32 dim 1 : vector<4x256xf32>, i32 -> vector<4x256xf32>
    %cst_51 = arith.constant 0.000000e+00 : f32
    %80 = vector.shape_cast %78 : vector<1x256xi1> to vector<1x256xi1>
    %81 = vector.broadcast %80 : vector<1x256xi1> to vector<4x256xi1>
    %82 = vector.broadcast %cst_51 : f32 to vector<4x256xf32>
    %83 = arith.select %81, %79, %82 : vector<4x256xi1>, vector<4x256xf32>
    %c40 = arith.constant 40 : index
    %c0_52 = arith.constant 0 : index
    %84 = vector.load %arg5[%c40, %c0_52] : memref<72x512xf32, #tpu.memory_space<vmem>>, vector<4x256xf32>
    tpu.vector_store %arg5[%c40, %c0_52], %83 {strides = array<i32>} : memref<72x512xf32, #tpu.memory_space<vmem>>, vector<4x256xf32>,
    %c255_i32_53 = arith.constant 255 : i32
    %85 = tpu.dynamic_rotate %13 by %c255_i32_53 dim 1 : vector<4x256xf32>, i32 -> vector<4x256xf32>
    %cst_54 = arith.constant 0.000000e+00 : f32
    %86 = vector.shape_cast %78 : vector<1x256xi1> to vector<1x256xi1>
    %87 = vector.broadcast %86 : vector<1x256xi1> to vector<4x256xi1>
    %88 = vector.broadcast %cst_54 : f32 to vector<4x256xf32>
    %89 = arith.select %87, %85, %88 : vector<4x256xi1>, vector<4x256xf32>
    %c40_55 = arith.constant 40 : index
    %c256_56 = arith.constant 256 : index
    %90 = vector.load %arg5[%c40_55, %c256_56] : memref<72x512xf32, #tpu.memory_space<vmem>>, vector<4x256xf32>
    tpu.vector_store %arg5[%c40_55, %c256_56], %89 {strides = array<i32>} : memref<72x512xf32, #tpu.memory_space<vmem>>, vector<4x256xf32>,
    %c6 = arith.constant 6 : index
    %c0_57 = arith.constant 0 : index
    %91 = vector.load %arg3[%c6, %c0_57] : memref<9x256xi32, #tpu.memory_space<vmem>>, vector<1x256xi32>
    %c0_i32_58 = arith.constant 0 : i32
    %92 = vector.broadcast %c0_i32_58 : i32 to vector<1x256xi32>
    %93 = arith.cmpi ne, %91, %92 : vector<1x256xi32>
    %c241_i32 = arith.constant 241 : i32
    %94 = tpu.dynamic_rotate %11 by %c241_i32 dim 1 : vector<4x256xf32>, i32 -> vector<4x256xf32>
    %cst_59 = arith.constant 0.000000e+00 : f32
    %95 = vector.shape_cast %93 : vector<1x256xi1> to vector<1x256xi1>
    %96 = vector.broadcast %95 : vector<1x256xi1> to vector<4x256xi1>
    %97 = vector.broadcast %cst_59 : f32 to vector<4x256xf32>
    %98 = arith.select %96, %94, %97 : vector<4x256xi1>, vector<4x256xf32>
    %c48 = arith.constant 48 : index
    %c0_60 = arith.constant 0 : index
    %99 = vector.load %arg5[%c48, %c0_60] : memref<72x512xf32, #tpu.memory_space<vmem>>, vector<4x256xf32>
    tpu.vector_store %arg5[%c48, %c0_60], %98 {strides = array<i32>} : memref<72x512xf32, #tpu.memory_space<vmem>>, vector<4x256xf32>,
    %c241_i32_61 = arith.constant 241 : i32
    %100 = tpu.dynamic_rotate %13 by %c241_i32_61 dim 1 : vector<4x256xf32>, i32 -> vector<4x256xf32>
    %cst_62 = arith.constant 0.000000e+00 : f32
    %101 = vector.shape_cast %93 : vector<1x256xi1> to vector<1x256xi1>
    %102 = vector.broadcast %101 : vector<1x256xi1> to vector<4x256xi1>
    %103 = vector.broadcast %cst_62 : f32 to vector<4x256xf32>
    %104 = arith.select %102, %100, %103 : vector<4x256xi1>, vector<4x256xf32>
    %c48_63 = arith.constant 48 : index
    %c256_64 = arith.constant 256 : index
    %105 = vector.load %arg5[%c48_63, %c256_64] : memref<72x512xf32, #tpu.memory_space<vmem>>, vector<4x256xf32>
    tpu.vector_store %arg5[%c48_63, %c256_64], %104 {strides = array<i32>} : memref<72x512xf32, #tpu.memory_space<vmem>>, vector<4x256xf32>,
    %c7 = arith.constant 7 : index
    %c0_65 = arith.constant 0 : index
    %106 = vector.load %arg3[%c7, %c0_65] : memref<9x256xi32, #tpu.memory_space<vmem>>, vector<1x256xi32>
    %c0_i32_66 = arith.constant 0 : i32
    %107 = vector.broadcast %c0_i32_66 : i32 to vector<1x256xi32>
    %108 = arith.cmpi ne, %106, %107 : vector<1x256xi32>
    %c240_i32 = arith.constant 240 : i32
    %109 = tpu.dynamic_rotate %11 by %c240_i32 dim 1 : vector<4x256xf32>, i32 -> vector<4x256xf32>
    %cst_67 = arith.constant 0.000000e+00 : f32
    %110 = vector.shape_cast %108 : vector<1x256xi1> to vector<1x256xi1>
    %111 = vector.broadcast %110 : vector<1x256xi1> to vector<4x256xi1>
    %112 = vector.broadcast %cst_67 : f32 to vector<4x256xf32>
    %113 = arith.select %111, %109, %112 : vector<4x256xi1>, vector<4x256xf32>
    %c56 = arith.constant 56 : index
    %c0_68 = arith.constant 0 : index
    %114 = vector.load %arg5[%c56, %c0_68] : memref<72x512xf32, #tpu.memory_space<vmem>>, vector<4x256xf32>
    tpu.vector_store %arg5[%c56, %c0_68], %113 {strides = array<i32>} : memref<72x512xf32, #tpu.memory_space<vmem>>, vector<4x256xf32>,
    %c240_i32_69 = arith.constant 240 : i32
    %115 = tpu.dynamic_rotate %13 by %c240_i32_69 dim 1 : vector<4x256xf32>, i32 -> vector<4x256xf32>
    %cst_70 = arith.constant 0.000000e+00 : f32
    %116 = vector.shape_cast %108 : vector<1x256xi1> to vector<1x256xi1>
    %117 = vector.broadcast %116 : vector<1x256xi1> to vector<4x256xi1>
    %118 = vector.broadcast %cst_70 : f32 to vector<4x256xf32>
    %119 = arith.select %117, %115, %118 : vector<4x256xi1>, vector<4x256xf32>
    %c56_71 = arith.constant 56 : index
    %c256_72 = arith.constant 256 : index
    %120 = vector.load %arg5[%c56_71, %c256_72] : memref<72x512xf32, #tpu.memory_space<vmem>>, vector<4x256xf32>
    tpu.vector_store %arg5[%c56_71, %c256_72], %119 {strides = array<i32>} : memref<72x512xf32, #tpu.memory_space<vmem>>, vector<4x256xf32>,
    %c8_73 = arith.constant 8 : index
    %c0_74 = arith.constant 0 : index
    %121 = vector.load %arg3[%c8_73, %c0_74] : memref<9x256xi32, #tpu.memory_space<vmem>>, vector<1x256xi32>
    %c0_i32_75 = arith.constant 0 : i32
    %122 = vector.broadcast %c0_i32_75 : i32 to vector<1x256xi32>
    %123 = arith.cmpi ne, %121, %122 : vector<1x256xi32>
    %c239_i32 = arith.constant 239 : i32
    %124 = tpu.dynamic_rotate %11 by %c239_i32 dim 1 : vector<4x256xf32>, i32 -> vector<4x256xf32>
    %cst_76 = arith.constant 0.000000e+00 : f32
    %125 = vector.shape_cast %123 : vector<1x256xi1> to vector<1x256xi1>
    %126 = vector.broadcast %125 : vector<1x256xi1> to vector<4x256xi1>
    %127 = vector.broadcast %cst_76 : f32 to vector<4x256xf32>
    %128 = arith.select %126, %124, %127 : vector<4x256xi1>, vector<4x256xf32>
    %c64 = arith.constant 64 : index
    %c0_77 = arith.constant 0 : index
    %129 = vector.load %arg5[%c64, %c0_77] : memref<72x512xf32, #tpu.memory_space<vmem>>, vector<4x256xf32>
    tpu.vector_store %arg5[%c64, %c0_77], %128 {strides = array<i32>} : memref<72x512xf32, #tpu.memory_space<vmem>>, vector<4x256xf32>,
    %c239_i32_78 = arith.constant 239 : i32
    %130 = tpu.dynamic_rotate %13 by %c239_i32_78 dim 1 : vector<4x256xf32>, i32 -> vector<4x256xf32>
    %cst_79 = arith.constant 0.000000e+00 : f32
    %131 = vector.shape_cast %123 : vector<1x256xi1> to vector<1x256xi1>
    %132 = vector.broadcast %131 : vector<1x256xi1> to vector<4x256xi1>
    %133 = vector.broadcast %cst_79 : f32 to vector<4x256xf32>
    %134 = arith.select %132, %130, %133 : vector<4x256xi1>, vector<4x256xf32>
    %c64_80 = arith.constant 64 : index
    %c256_81 = arith.constant 256 : index
    %135 = vector.load %arg5[%c64_80, %c256_81] : memref<72x512xf32, #tpu.memory_space<vmem>>, vector<4x256xf32>
    tpu.vector_store %arg5[%c64_80, %c256_81], %134 {strides = array<i32>} : memref<72x512xf32, #tpu.memory_space<vmem>>, vector<4x256xf32>,
    %c0_82 = arith.constant 0 : index
    %c0_83 = arith.constant 0 : index
    %136 = vector.load %arg2[%c0_82, %c0_83] : memref<8x72xbf16, #tpu.memory_space<vmem>>, vector<8x72xbf16>
    %c0_84 = arith.constant 0 : index
    %c0_85 = arith.constant 0 : index
    %137 = vector.load %arg5[%c0_84, %c0_85] : memref<72x512xf32, #tpu.memory_space<vmem>>, vector<72x512xf32>
    %138 = arith.truncf %137 : vector<72x512xf32> to vector<72x512xbf16>
    %cst_86 = arith.constant dense<0.000000e+00> : vector<8x512xf32>
    %139 = tpu.matmul %136, %138, %cst_86 {dimension_numbers = #tpu.dot_dimension_numbers<[1], [0], [0], [1], [0, 0, 1, 1], [], []>} : vector<8x72xbf16>, vector<72x512xbf16>, vector<8x512xf32> -> vector<8x512xf32>
    %140 = vector.extract_strided_slice %139 {offsets = [0, 0], sizes = [8, 256], strides = [1, 1]} : vector<8x512xf32> to vector<8x256xf32>
    %c0_87 = arith.constant 0 : index
    %c0_88 = arith.constant 0 : index
    %c0_89 = arith.constant 0 : index
    %141 = vector.load %arg4[%c0_87, %c0_88, %c0_89] : memref<2x8x256xf32, #tpu.memory_space<vmem>>, vector<1x8x256xf32>
    %142 = vector.shape_cast %141 : vector<1x8x256xf32> to vector<8x256xf32>
    %143 = vector.shape_cast %140 : vector<8x256xf32> to vector<1x8x256xf32>
    tpu.vector_store %arg4[%c0_87, %c0_88, %c0_89], %143 {strides = array<i32>} : memref<2x8x256xf32, #tpu.memory_space<vmem>>, vector<1x8x256xf32>,
    %144 = vector.extract_strided_slice %139 {offsets = [0, 256], sizes = [8, 256], strides = [1, 1]} : vector<8x512xf32> to vector<8x256xf32>
    %c1_90 = arith.constant 1 : index
    %c0_91 = arith.constant 0 : index
    %c0_92 = arith.constant 0 : index
    %145 = vector.load %arg4[%c1_90, %c0_91, %c0_92] : memref<2x8x256xf32, #tpu.memory_space<vmem>>, vector<1x8x256xf32>
    %146 = vector.shape_cast %145 : vector<1x8x256xf32> to vector<8x256xf32>
    %147 = vector.shape_cast %144 : vector<8x256xf32> to vector<1x8x256xf32>
    tpu.vector_store %arg4[%c1_90, %c0_91, %c0_92], %147 {strides = array<i32>} : memref<2x8x256xf32, #tpu.memory_space<vmem>>, vector<1x8x256xf32>,
    return
  }
  func.func @transform_0(%arg0: i32) -> (i32, i32, i32) {
    %c0_i32 = arith.constant 0 : i32
    %c0_i32_0 = arith.constant 0 : i32
    %c0_i32_1 = arith.constant 0 : i32
    %c0_i32_2 = arith.constant 0 : i32
    return %c0_i32, %c0_i32_0, %c0_i32_1 : i32, i32, i32
  }
  func.func @transform_1(%arg0: i32) -> (i32, i32) {
    %c0_i32 = arith.constant 0 : i32
    %c0_i32_0 = arith.constant 0 : i32
    %c0_i32_1 = arith.constant 0 : i32
    return %c0_i32, %c0_i32_0 : i32, i32
  }
  func.func @transform_2(%arg0: i32) -> (i32, i32) {
    %c0_i32 = arith.constant 0 : i32
    %c0_i32_0 = arith.constant 0 : i32
    %c0_i32_1 = arith.constant 0 : i32
    return %c0_i32, %c0_i32_0 : i32, i32
  }
  func.func @transform_3(%arg0: i32) -> (i32, i32, i32) {
    %c0_i32 = arith.constant 0 : i32
    %c0_i32_0 = arith.constant 0 : i32
    %c0_i32_1 = arith.constant 0 : i32
    %c0_i32_2 = arith.constant 0 : i32
    return %c0_i32, %c0_i32_0, %c0_i32_1 : i32, i32, i32
  }
}

</mosaic_0001>

<bundles_post_ra>
// kernel: tpu_custom_call.1
= control target key start
LH: loop header
LB: loop body
LE: loop exit
PB: predicated region body
PF: predicated region fallthrough
CT: control target
= control target key end

     0   :  { %8 = vsyncpa [#allocation4], 0  ;;  %s1017_s0 = inlined_call_operand.hbm [shape: f32[2,4,256], index: 0, kind: input, shape index: {}]   ;;  %s1018_s1 = inlined_call_operand.hbm [shape: bf16[8,72], index: 1, kind: input, shape index: {}]   ;;  %s1019_s2 = inlined_call_operand.hbm [shape: s32[9,256], index: 2, kind: input, shape index: {}]   ;;  %s1020_s3 = inlined_call_operand.hbm [shape: f32[2,8,256], index: 3, kind: output, shape index: {}]  }
   0x1   :  { %9 = vsyncpa [#allocation7], 0 }
   0x2   :  { %10 = vsyncpa [#allocation5], 0  ;;  %s681_s12 = smov [#allocation6]   ;;  %s682_s14 = smov [#allocation3]  }
   0x3   :  { %s29_s13 = sshll.u32 %s681_s12, 4  ;;  %s16_s15 = sshll.u32 %s682_s14, 4  ;;  %s30_s13 = int_to_ptr.vmem [resolvable:$true] %s29_s13  ;;  %s718_s15 = int_to_ptr.vmem [resolvable:$true] %s16_s15 }
   0x4   :  { %s587_s18 = scalar_lea.hbm %s1018_s1, 64 }
   0x5   :  { %p588_p0 = scmp.ne.s32.totalorder %s1018_s1, %s587_s18  ;;  %p591_p1 = scmp.lt.u32.totalorder %s587_s18, %s1018_s1 }
   0x7   :  { %p593_p2 = pnand %p591_p1, %p588_p0 }
   0x9   :  { %596 = shalt.err (!%p593_p2)
}
   0xa   :  { %s597_s23 = scalar_lea.vmem %s30_s13, 64  ;;  %p602_p4 = scmp.lt.s32.totalorder %s30_s13, %s30_s13 }
   0xb   :  { %p598_p3 = scmp.ne.s32.totalorder %s30_s13, %s597_s23  ;;  %p603_p5 = scmp.lt.s32.totalorder %s597_s23, %s597_s23 }
   0xd   :  { %p604_p6 = por %p603_p5, %p602_p4 }
   0xf   :  { %p605_p7 = pnand %p604_p6, %p598_p3 }
  0x11   :  { %608 = shalt.err (!%p605_p7)
}
  0x12   :  { %32 = dma.hbm_to_vmem [thread:$0]  %s1018_s1, 64, %s30_s13, [#allocation7]  }
  0x13   :  { %s609_s28 = scalar_lea.hbm %s1017_s0, 256 }
  0x14   :  { %p610_p8 = scmp.ne.s32.totalorder %s1017_s0, %s609_s28  ;;  %p613_p9 = scmp.lt.u32.totalorder %s609_s28, %s1017_s0 }
  0x16   :  { %p615_p10 = pnand %p613_p9, %p610_p8 }
  0x18   :  { %618 = shalt.err (!%p615_p10)
}
  0x19   :  { %s619_s6 = scalar_lea.vmem %s718_s15, 256  ;;  %p624_p12 = scmp.lt.s32.totalorder %s718_s15, %s718_s15 }
  0x1a   :  { %p620_p11 = scmp.ne.s32.totalorder %s718_s15, %s619_s6  ;;  %p625_p13 = scmp.lt.s32.totalorder %s619_s6, %s619_s6 }
  0x1c   :  { %p626_p0 = por %p625_p13, %p624_p12 }
  0x1e   :  { %p627_p1 = pnand %p626_p0, %p620_p11 }
  0x20   :  { %630 = shalt.err (!%p627_p1)
}
  0x21   :  { %s683_s1 = smov 128   ;;  %s684_s7 = smov 8  }
  0x22   :  { %22 = dma.hbm_to_vmem [thread:$0]  %s1017_s0, 256, %s718_s15, [#allocation4], %s683_s1, %s683_s1, %s684_s7  }
  0x23   :  { %s685_s10 = smov [#allocation8]   ;;  %s631_s14 = scalar_lea.hbm %s1019_s2, 512 }
  0x24   :  { %s38_s11 = sshll.u32 %s685_s10, 4  ;;  %p632_p2 = scmp.ne.s32.totalorder %s1019_s2, %s631_s14  ;;  %s39_s11 = int_to_ptr.vmem [resolvable:$true] %s38_s11 }
  0x25   :  { %p635_p3 = scmp.lt.u32.totalorder %s631_s14, %s1019_s2 }
  0x27   :  { %p637_p4 = pnand %p635_p3, %p632_p2 }
  0x29   :  { %640 = shalt.err (!%p637_p4)
}
  0x2a   :  { %s641_s20 = scalar_lea.vmem %s39_s11, 512  ;;  %p646_p6 = scmp.lt.s32.totalorder %s39_s11, %s39_s11 }
  0x2b   :  { %p642_p5 = scmp.ne.s32.totalorder %s39_s11, %s641_s20  ;;  %p647_p7 = scmp.lt.s32.totalorder %s641_s20, %s641_s20 }
  0x2d   :  { %p648_p8 = por %p647_p7, %p646_p6 }
  0x2f   :  { %p649_p9 = pnand %p648_p8, %p642_p5 }
  0x31   :  { %652 = shalt.err (!%p649_p9)
}
  0x32   :  { %s686_s0 = smov 256   ;;  %s687_s15 = smov 16  }
  0x33   :  { %44 = dma.hbm_to_vmem [thread:$0]  %s1019_s2, 512, %s39_s11, [#allocation7], %s686_s0, %s686_s0, %s687_s15  }
  0x34   :  { %675 = dma.done.wait [#allocation4], 256  }
  0x35   :  { %676 = vsyncadd [#allocation4], 4294967040 }
  0x36   :  { %677 = dma.done.wait [#allocation7], 576  }
  0x37   :  { %678 = vsyncadd [#allocation7], 4294966720  ;;  %v688_v0 = vmov 0.0   ;;  %v689_v1 = vmov 0   ;;  %v93_v2 = vld [vmem:[#allocation3 + $0x8] sm:$0xff]  ;;  %v91_v3 = vld [vmem:[#allocation3] sm:$0xff]  ;;  %v103_v6 = vlaneseq }
  0x38   :  { %56 = vst [vmem:[#allocation2 + $0x8] sm:$0xf0] %v688_v0  ;;  %60 = vst [vmem:[#allocation2 + $0x28] sm:$0xf0] %v688_v0  ;;  %491 = vmatprep.mubr.bf16.mxu0 %v689_v1  ;;  %532 = vmatprep.mubr.bf16.mxu1 %v689_v1  ;;  %s690_s2 = smov 17   ;;  %v124_v4 = vcombine.high %v93_v2, %v93_v2  ;;  %v97_v5 = vcombine.high %v91_v3, %v91_v3  ;;  %s691_s23 = smov 15  }
  0x39   :  { %55 = vst [vmem:[#allocation2] sm:$0xf0] %v688_v0  ;;  %57 = vst [vmem:[#allocation2 + $0x10] sm:$0xf0] %v688_v0  ;;  %126 = vrot.lane.b32.xlu1 %v93_v2, %s690_s2  ;;  %99 = vrot.lane.b32.xlu0 %v91_v3, %s690_s2  ;;  %s692_s24 = smov 1   ;;  %s693_s25 = smov 127  }
  0x3a   :  { %58 = vst [vmem:[#allocation2 + $0x18] sm:$0xf0] %v688_v0  ;;  %59 = vst [vmem:[#allocation2 + $0x20] sm:$0xf0] %v688_v0  ;;  %s694_s26 = smov 113   ;;  %s695_s27 = smov 112  }
  0x3b   :  { %61 = vst [vmem:[#allocation2 + $0x30] sm:$0xf0] %v688_v0  ;;  %62 = vst [vmem:[#allocation2 + $0x38] sm:$0xf0] %v688_v0  ;;  %s696_s28 = smov 111   ;;  %v110_v8 = vshrl.u32 %v103_v6, 7 }
  0x3c   :  { %63 = vst [vmem:[#allocation2 + $0x40] sm:$0xf0] %v688_v0  ;;  %64 = vst [vmem:[#allocation2 + $0x48] sm:$0xf0] %v688_v0  ;;  %v775_v13 = vand.u32 127, %v103_v6  ;;  %s697_s29 = smov [#allocation9]  }
  0x3d   :  { %65 = vst [vmem:[#allocation2 + $0x50] sm:$0xf0] %v688_v0  ;;  %66 = vst [vmem:[#allocation2 + $0x58] sm:$0xf0] %v688_v0  ;;  %128 = vrot.lane.b32.xlu1 %v124_v4, %s690_s2  ;;  %139 = vrot.lane.b32.xlu0 %v91_v3, %s687_s15  ;;  %v770_v10 = vsub.s32 0, %v110_v8  ;;  %v772_v11 = vsub.s32 1, %v110_v8 }
  0x3e   :  { %67 = vst [vmem:[#allocation2 + $0x60] sm:$0xf0] %v688_v0  ;;  %68 = vst [vmem:[#allocation2 + $0x68] sm:$0xf0] %v688_v0  ;;  %vm105_vm2 = vcmp.lt.s32.totalorder %v775_v13, 17  ;;  %vm143_vm6 = vcmp.lt.s32.totalorder %v775_v13, 16 }
  0x3f   :  { %69 = vst [vmem:[#allocation2 + $0x70] sm:$0xf0] %v688_v0  ;;  %70 = vst [vmem:[#allocation2 + $0x78] sm:$0xf0] %v688_v0  ;;  %vm178_vm10 = vcmp.lt.s32.totalorder %v775_v13, 15  ;;  %vm213_vm14 = vcmp.lt.s32.totalorder %v775_v13, 1 }
  0x40   :  { %71 = vst [vmem:[#allocation2 + $0x80] sm:$0xf0] %v688_v0  ;;  %72 = vst [vmem:[#allocation2 + $0x88] sm:$0xf0] %v688_v0  ;;  %s551_s30 = sshll.u32 %s697_s29, 4  ;;  %s552_s30 = int_to_ptr.vmem [resolvable:$true] %s551_s30 }
  0x41   :  { %73 = vst [vmem:[#allocation2 + $0x90] sm:$0xf0] %v688_v0  ;;  %74 = vst [vmem:[#allocation2 + $0x98] sm:$0xf0] %v688_v0  ;;  %141 = vrot.lane.b32.xlu1 %v97_v5, %s687_s15  ;;  %101 = vrot.lane.b32.xlu0 %v97_v5, %s690_s2  ;;  %s653_s4 = scalar_lea.vmem %s552_s30, 512  ;;  %p658_p11 = scmp.lt.s32.totalorder %s552_s30, %s552_s30 }
  0x42   :  { %75 = vst [vmem:[#allocation2 + $0xa0] sm:$0xf0] %v688_v0  ;;  %76 = vst [vmem:[#allocation2 + $0xa8] sm:$0xf0] %v688_v0  ;;  %p654_p10 = scmp.ne.s32.totalorder %s552_s30, %s653_s4  ;;  %p659_p12 = scmp.lt.s32.totalorder %s653_s4, %s653_s4 }
  0x43   :  { %77 = vst [vmem:[#allocation2 + $0xb0] sm:$0xf0] %v688_v0  ;;  %78 = vst [vmem:[#allocation2 + $0xb8] sm:$0xf0] %v688_v0 }
  0x44   :  { %79 = vst [vmem:[#allocation2 + $0xc0] sm:$0xf0] %v688_v0  ;;  %80 = vst [vmem:[#allocation2 + $0xc8] sm:$0xf0] %v688_v0  ;;  %p660_p13 = por %p659_p12, %p658_p11 }
  0x45   :  { %81 = vst [vmem:[#allocation2 + $0xd0] sm:$0xf0] %v688_v0  ;;  %82 = vst [vmem:[#allocation2 + $0xd8] sm:$0xf0] %v688_v0  ;;  %163 = vrot.lane.b32.xlu1 %v124_v4, %s687_s15  ;;  %161 = vrot.lane.b32.xlu0 %v93_v2, %s687_s15 }
  0x46   :  { %83 = vst [vmem:[#allocation2 + $0xe0] sm:$0xf0] %v688_v0  ;;  %84 = vst [vmem:[#allocation2 + $0xe8] sm:$0xf0] %v688_v0  ;;  %p661_p0 = pnand %p660_p13, %p654_p10 }
  0x47   :  { %85 = vst [vmem:[#allocation2 + $0xf0] sm:$0xf0] %v688_v0  ;;  %86 = vst [vmem:[#allocation2 + $0xf8] sm:$0xf0] %v688_v0 }
  0x48   :  { %87 = vst [vmem:[#allocation2 + $0x100] sm:$0xf0] %v688_v0  ;;  %88 = vst [vmem:[#allocation2 + $0x108] sm:$0xf0] %v688_v0 }
  0x49   :  { %89 = vst [vmem:[#allocation2 + $0x110] sm:$0xf0] %v688_v0  ;;  %90 = vst [vmem:[#allocation2 + $0x118] sm:$0xf0] %v688_v0  ;;  %176 = vrot.lane.b32.xlu1 %v97_v5, %s691_s23  ;;  %174 = vrot.lane.b32.xlu0 %v91_v3, %s691_s23 }
  0x4a   :  { %243 = vst [vmem:[#allocation2 + $0x90] sm:$0xf] %v93_v2  ;;  %241 = vst [vmem:[#allocation2 + $0x80] sm:$0xf] %v91_v3 }
  0x4b   :  { %244 = vst [vmem:[#allocation2 + $0x98] sm:$0xf] %v124_v4  ;;  %242 = vst [vmem:[#allocation2 + $0x88] sm:$0xf] %v97_v5 }
  0x4c   :  { %v94_v7 = vld [vmem:[#allocation8] ss:$8 sm:$0x3]  ;;  %v137_v9 = vld [vmem:[#allocation8 + $0x1] ss:$8 sm:$0x3] }
  0x4d   :  { %198 = vrot.lane.b32.xlu1 %v124_v4, %s691_s23  ;;  %196 = vrot.lane.b32.xlu0 %v93_v2, %s691_s23  ;;  %vm95_vm0 = vcmp.ne.s32.totalorder %v94_v7, 0  ;;  %vm138_vm1 = vcmp.ne.s32.totalorder %v137_v9, 0  ;;  %v172_v19 = vld [vmem:[#allocation8 + $0x2] ss:$8 sm:$0x3] }
  0x4e   :  { %v108_v12 = vsel %vm95_vm0, 1, %v689_v1  ;;  %v146_v18 = vsel %vm138_vm1, 1, %v689_v1  ;;  %vm173_vm5 = vcmp.ne.s32.totalorder %v172_v19, 0  ;;  %v207_v39 = vld [vmem:[#allocation8 + $0x3] ss:$8 sm:$0x3] }
  0x4f   :  { %v112_v14 = vrot.slane %v108_v12, %v770_v10  ;;  %v116_v15 = vrot.slane %v108_v12, %v772_v11  ;;  %v150_v22 = vrot.slane %v146_v18, %v770_v10  ;;  %v154_v23 = vrot.slane %v146_v18, %v772_v11  ;;  %v246_v59 = vld [vmem:[#allocation8 + $0x5] ss:$8 sm:$0x3]  ;;  %v281_v31 = vld [vmem:[#allocation8 + $0x6] ss:$8 sm:$0x3] }
  0x50   :  { %v181_v34 = vsel %vm173_vm5, 1, %v689_v1  ;;  %vm208_vm9 = vcmp.ne.s32.totalorder %v207_v39, 0  ;;  %vm247_vm13 = vcmp.ne.s32.totalorder %v246_v59, 0  ;;  %vm282_vm1 = vcmp.ne.s32.totalorder %v281_v31, 0 }
  0x51   :  { %211 = vrot.lane.b32.xlu1 %v97_v5, %s692_s24  ;;  %209 = vrot.lane.b32.xlu0 %v91_v3, %s692_s24  ;;  %vm781_vm3 = vcmp.eq.s32.totalorder %v112_v14, 1  ;;  %vm785_vm4 = vcmp.eq.s32.totalorder %v116_v15, 1  ;;  %vm800_vm7 = vcmp.eq.s32.totalorder %v150_v22, 1  ;;  %vm804_vm8 = vcmp.eq.s32.totalorder %v154_v23, 1  ;;  %v404_v31 = vld [vmem:[#allocation2 + $0x90] sm:$0xff] }
  0x52   :  { %v185_v44 = vrot.slane %v181_v34, %v770_v10  ;;  %v189_v45 = vrot.slane %v181_v34, %v772_v11  ;;  %v216_v56 = vsel %vm208_vm9, 1, %v689_v1 }
  0x54   :  { %vm836_vm11 = vcmp.eq.s32.totalorder %v185_v44, 1  ;;  %vm840_vm12 = vcmp.eq.s32.totalorder %v189_v45, 1  ;;  %v290_v44 = vsel %vm282_vm1, 1, %v689_v1  ;;  %vm442_vm1 = vcmask 588800  }
  0x55   :  { %233 = vrot.lane.b32.xlu1 %v124_v4, %s692_s24  ;;  %231 = vrot.lane.b32.xlu0 %v93_v2, %s692_s24 }
  0x59   :  { %250 = vrot.lane.b32.xlu1 %v97_v5, %s693_s25  ;;  %248 = vrot.lane.b32.xlu0 %v91_v3, %s693_s25 }
  0x5d   :  { %272 = vrot.lane.b32.xlu1 %v124_v4, %s693_s25  ;;  %270 = vrot.lane.b32.xlu0 %v93_v2, %s693_s25 }
  0x61   :  { %285 = vrot.lane.b32.xlu1 %v97_v5, %s694_s26  ;;  %283 = vrot.lane.b32.xlu0 %v91_v3, %s694_s26 }
  0x65   :  { %307 = vrot.lane.b32.xlu1 %v124_v4, %s694_s26  ;;  %305 = vrot.lane.b32.xlu0 %v93_v2, %s694_s26 }
  0x69   :  { %320 = vrot.lane.b32.xlu1 %v97_v5, %s695_s27  ;;  %318 = vrot.lane.b32.xlu0 %v91_v3, %s695_s27 }
  0x6d   :  { %342 = vrot.lane.b32.xlu1 %v124_v4, %s695_s27  ;;  %340 = vrot.lane.b32.xlu0 %v93_v2, %s695_s27 }
  0x71   :  { %355 = vrot.lane.b32.xlu1 %v97_v5, %s696_s28  ;;  %353 = vrot.lane.b32.xlu0 %v91_v3, %s696_s28  ;;  %v224_v5 = vrot.slane %v216_v56, %v772_v11 }
  0x73   :  { %vm868_vm0 = vcmp.eq.s32.totalorder %v224_v5, 1 }
  0x75   :  { %377 = vrot.lane.b32.xlu1 %v124_v4, %s696_s28  ;;  %375 = vrot.lane.b32.xlu0 %v93_v2, %s696_s28  ;;  %v220_v4 = vrot.slane %v216_v56, %v770_v10  ;;  %v294_v56 = vrot.slane %v290_v44, %v770_v10 }
  0x77   :  { %vm864_vm15 = vcmp.eq.s32.totalorder %v220_v4, 1 }
  0xab   :  { %v127_v16 = vpop.permute.xlu1 %126  ;;  %v100_v17 = vpop.permute.xlu0 %99 }
  0xaf   :  { %v129_v24 = vpop.permute.xlu1 %128  ;;  %v140_v25 = vpop.permute.xlu0 %139 }
  0xb0   :  { %v130_v26 = vsel %vm105_vm2, %v127_v16, %v129_v24  ;;  %v131_v27 = vsel %vm105_vm2, %v129_v24, %v127_v16 }
  0xb1   :  { %v132_v28 = vsel %vm781_vm3, %v131_v27, 0.0  ;;  %v133_v29 = vsel %vm785_vm4, %v130_v26, 0.0  ;;  %v255_v26 = vsel %vm247_vm13, 1, %v689_v1  ;;  %vm357_vm13 = vcmp.lt.s32.totalorder %v775_v13, 111 }
  0xb2   :  { %134 = vst [vmem:[#allocation2 + $0x10] sm:$0xf] %v132_v28  ;;  %135 = vst [vmem:[#allocation2 + $0x18] sm:$0xf] %v133_v29 }
  0xb3   :  { %v142_v32 = vpop.permute.xlu1 %141  ;;  %v102_v33 = vpop.permute.xlu0 %101 }
  0xb4   :  { %v144_v35 = vsel %vm143_vm6, %v140_v25, %v142_v32  ;;  %v145_v36 = vsel %vm143_vm6, %v142_v32, %v140_v25  ;;  %v106_v37 = vsel %vm105_vm2, %v100_v17, %v102_v33  ;;  %v107_v38 = vsel %vm105_vm2, %v102_v33, %v100_v17 }
  0xb5   :  { %v157_v40 = vsel %vm800_vm7, %v145_v36, 0.0  ;;  %v158_v41 = vsel %vm804_vm8, %v144_v35, 0.0  ;;  %v119_v42 = vsel %vm781_vm3, %v107_v38, 0.0  ;;  %v120_v43 = vsel %vm785_vm4, %v106_v37, 0.0 }
  0xb6   :  { %159 = vst [vmem:[#allocation2 + $0x20] sm:$0xf] %v157_v40  ;;  %160 = vst [vmem:[#allocation2 + $0x28] sm:$0xf] %v158_v41  ;;  %v259_v32 = vrot.slane %v255_v26, %v770_v10  ;;  %v263_v33 = vrot.slane %v255_v26, %v772_v11  ;;  %vm252_vm2 = vcmp.lt.s32.totalorder %v775_v13, 127 }
  0xb7   :  { %121 = vst [vmem:[#allocation2] sm:$0xf] %v119_v42  ;;  %122 = vst [vmem:[#allocation2 + $0x8] sm:$0xf] %v120_v43  ;;  %v164_v46 = vpop.permute.xlu1 %163  ;;  %v162_v47 = vpop.permute.xlu0 %161 }
  0xb8   :  { %v165_v48 = vsel %vm143_vm6, %v162_v47, %v164_v46  ;;  %v166_v49 = vsel %vm143_vm6, %v164_v46, %v162_v47  ;;  %vm893_vm3 = vcmp.eq.s32.totalorder %v259_v32, 1  ;;  %vm897_vm4 = vcmp.eq.s32.totalorder %v263_v33, 1 }
  0xb9   :  { %v167_v50 = vsel %vm800_vm7, %v166_v49, 0.0  ;;  %v168_v51 = vsel %vm804_vm8, %v165_v48, 0.0  ;;  %v389_v14 = vld [vmem:[#allocation2 + $0x18] sm:$0xff]  ;;  %v388_v18 = vld [vmem:[#allocation2 + $0x10] sm:$0xff]  ;;  %vm287_vm6 = vcmp.lt.s32.totalorder %v775_v13, 113  ;;  %vm921_vm7 = vcmp.eq.s32.totalorder %v294_v56, 1 }
  0xba   :  { %169 = vst [vmem:[#allocation2 + $0x30] sm:$0xf] %v167_v50  ;;  %170 = vst [vmem:[#allocation2 + $0x38] sm:$0xf] %v168_v51 }
  0xbb   :  { %v177_v54 = vpop.permute.xlu1 %176  ;;  %v175_v55 = vpop.permute.xlu0 %174  ;;  %v316_v48 = vld [vmem:[#allocation8 + $0x7] ss:$8 sm:$0x3] }
  0xbc   :  { %v179_v57 = vsel %vm178_vm10, %v175_v55, %v177_v54  ;;  %v180_v58 = vsel %vm178_vm10, %v177_v54, %v175_v55  ;;  %vm317_vm5 = vcmp.ne.s32.totalorder %v316_v48, 0 }
  0xbd   :  { %v192_v60 = vsel %vm836_vm11, %v180_v58, 0.0  ;;  %v193_v61 = vsel %vm840_vm12, %v179_v57, 0.0  ;;  %v391_v63 = vld [vmem:[#allocation2 + $0x28] sm:$0xff]  ;;  %v390_v3 = vld [vmem:[#allocation2 + $0x20] sm:$0xff]  ;;  %v298_v57 = vrot.slane %v290_v44, %v772_v11 }
  0xbe   :  { %v387_v62 = vld [vmem:[#allocation2 + $0x8] sm:$0xff]  ;;  %v386_v0 = vld [vmem:[#allocation2] sm:$0xff]  ;;  %194 = vst [vmem:[#allocation2 + $0x40] sm:$0xf] %v192_v60  ;;  %195 = vst [vmem:[#allocation2 + $0x48] sm:$0xf] %v193_v61 }
  0xbf   :  { %v423_v2 = vpack.c.bf16 %v391_v63, %v387_v62  ;;  %v199_v6 = vpop.permute.xlu1 %198  ;;  %v197_v7 = vpop.permute.xlu0 %196  ;;  %v422_v8 = vpack.c.bf16 %v390_v3, %v386_v0  ;;  %vm925_vm8 = vcmp.eq.s32.totalorder %v298_v57, 1 }
  0xc0   :  { %v200_v9 = vsel %vm178_vm10, %v197_v7, %v199_v6  ;;  %v201_v12 = vsel %vm178_vm10, %v199_v6, %v197_v7  ;;  %vm322_vm10 = vcmp.lt.s32.totalorder %v775_v13, 112 }
  0xc1   :  { %459 = vmatprep.subr.bf16.mxu0 %v423_v2  ;;  %v202_v15 = vsel %vm836_vm11, %v201_v12, 0.0  ;;  %v203_v16 = vsel %vm840_vm12, %v200_v9, 0.0  ;;  %v393_v17 = vld [vmem:[#allocation2 + $0x38] sm:$0xff]  ;;  %v392_v19 = vld [vmem:[#allocation2 + $0x30] sm:$0xff] }
  0xc2   :  { %460 = vmatpush1.bf16.msra.mxu0 %v422_v8  ;;  %204 = vst [vmem:[#allocation2 + $0x50] sm:$0xf] %v202_v15  ;;  %205 = vst [vmem:[#allocation2 + $0x58] sm:$0xf] %v203_v16  ;;  %v425_v22 = vpack.c.bf16 %v393_v17, %v389_v14  ;;  %v424_v23 = vpack.c.bf16 %v392_v19, %v388_v18  ;;  %v403_v14 = vld [vmem:[#allocation2 + $0x88] sm:$0xff]  ;;  %v402_v15 = vld [vmem:[#allocation2 + $0x80] sm:$0xff] }
  0xc3   :  { %v212_v24 = vpop.permute.xlu1 %211  ;;  %v210_v25 = vpop.permute.xlu0 %209  ;;  %v325_v16 = vsel %vm317_vm5, 1, %v689_v1  ;;  %v351_v19 = vld [vmem:[#allocation8 + $0x10] ss:$8 sm:$0x3] }
  0xc4   :  { %v214_v27 = vsel %vm213_vm14, %v210_v25, %v212_v24  ;;  %v215_v28 = vsel %vm213_vm14, %v212_v24, %v210_v25  ;;  %500 = vmatprep.subr.bf16.mxu1 %v425_v22  ;;  %v329_v26 = vrot.slane %v325_v16, %v770_v10  ;;  %vm352_vm9 = vcmp.ne.s32.totalorder %v351_v19, 0 }
  0xc5   :  { %v227_v29 = vsel %vm864_vm15, %v215_v28, 0.0  ;;  %v228_v30 = vsel %vm868_vm0, %v214_v27, 0.0  ;;  %501 = vmatpush1.bf16.msra.mxu1 %v424_v23  ;;  %v395_v47 = vld [vmem:[#allocation2 + $0x48] sm:$0xff]  ;;  %v394_v52 = vld [vmem:[#allocation2 + $0x40] sm:$0xff]  ;;  %v333_v27 = vrot.slane %v325_v16, %v772_v11  ;;  %v360_v44 = vsel %vm352_vm9, 1, %v689_v1 }
  0xc6   :  { %229 = vst [vmem:[#allocation2 + $0x60] sm:$0xf] %v227_v29  ;;  %230 = vst [vmem:[#allocation2 + $0x68] sm:$0xf] %v228_v30  ;;  %v405_v30 = vld [vmem:[#allocation2 + $0x98] sm:$0xff]  ;;  %vm950_vm11 = vcmp.eq.s32.totalorder %v329_v26, 1  ;;  %v368_v1 = vrot.slane %v360_v44, %v772_v11 }
  0xc7   :  { %v234_v34 = vpop.permute.xlu1 %233  ;;  %v232_v35 = vpop.permute.xlu0 %231  ;;  %vm954_vm12 = vcmp.eq.s32.totalorder %v333_v27, 1 }
  0xc8   :  { %v235_v36 = vsel %vm213_vm14, %v232_v35, %v234_v34  ;;  %v236_v37 = vsel %vm213_vm14, %v234_v34, %v232_v35 }
  0xc9   :  { %v237_v38 = vsel %vm864_vm15, %v236_v37, 0.0  ;;  %v238_v39 = vsel %vm868_vm0, %v235_v36, 0.0  ;;  %v397_v62 = vld [vmem:[#allocation2 + $0x58] sm:$0xff]  ;;  %v396_v3 = vld [vmem:[#allocation2 + $0x50] sm:$0xff]  ;;  %vm982_vm15 = vcmp.eq.s32.totalorder %v368_v1, 1  ;;  %vm446_vm0 = vcmask 1043456  }
  0xca   :  { %239 = vst [vmem:[#allocation2 + $0x70] sm:$0xf] %v237_v38  ;;  %240 = vst [vmem:[#allocation2 + $0x78] sm:$0xf] %v238_v39 }
  0xcb   :  { %v251_v42 = vpop.permute.xlu1 %250  ;;  %v249_v43 = vpop.permute.xlu0 %248 }
  0xcc   :  { %v253_v45 = vsel %vm252_vm2, %v249_v43, %v251_v42  ;;  %v254_v46 = vsel %vm252_vm2, %v251_v42, %v249_v43 }
  0xcd   :  { %v266_v49 = vsel %vm893_vm3, %v253_v45, 0.0  ;;  %v267_v50 = vsel %vm897_vm4, %v254_v46, 0.0  ;;  %v399_v51 = vld [vmem:[#allocation2 + $0x68] sm:$0xff]  ;;  %v398_v53 = vld [vmem:[#allocation2 + $0x60] sm:$0xff] }
  0xce   :  { %268 = vst [vmem:[#allocation2 + $0xa0] sm:$0xf] %v266_v49  ;;  %269 = vst [vmem:[#allocation2 + $0xa8] sm:$0xf] %v267_v50  ;;  %v427_v54 = vpack.c.bf16 %v399_v51, %v395_v47  ;;  %v426_v55 = vpack.c.bf16 %v398_v53, %v394_v52  ;;  %v364_v49 = vrot.slane %v360_v44, %v770_v10 }
  0xcf   :  { %v273_v58 = vpop.permute.xlu1 %272  ;;  %v271_v59 = vpop.permute.xlu0 %270 }
  0xd0   :  { %v274_v60 = vsel %vm252_vm2, %v271_v59, %v273_v58  ;;  %v275_v61 = vsel %vm252_vm2, %v273_v58, %v271_v59  ;;  %461 = vmatprep.subr.bf16.mxu0 %v427_v54  ;;  %vm978_vm14 = vcmp.eq.s32.totalorder %v364_v49, 1 }
  0xd1   :  { %v276_v63 = vsel %vm893_vm3, %v274_v60, 0.0  ;;  %v277_v0 = vsel %vm897_vm4, %v275_v61, 0.0  ;;  %462 = vmatpush1.bf16.msra.mxu0 %v426_v55  ;;  %v401_v2 = vld [vmem:[#allocation2 + $0x78] sm:$0xff]  ;;  %v400_v4 = vld [vmem:[#allocation2 + $0x70] sm:$0xff] }
  0xd2   :  { %278 = vst [vmem:[#allocation2 + $0xb0] sm:$0xf] %v276_v63  ;;  %279 = vst [vmem:[#allocation2 + $0xb8] sm:$0xf] %v277_v0  ;;  %v429_v7 = vpack.c.bf16 %v401_v2, %v397_v62  ;;  %v428_v8 = vpack.c.bf16 %v400_v4, %v396_v3 }
  0xd3   :  { %v286_v9 = vpop.permute.xlu1 %285  ;;  %v284_v12 = vpop.permute.xlu0 %283 }
  0xd4   :  { %v288_v17 = vsel %vm287_vm6, %v284_v12, %v286_v9  ;;  %v289_v18 = vsel %vm287_vm6, %v286_v9, %v284_v12  ;;  %502 = vmatprep.subr.bf16.mxu1 %v429_v7 }
  0xd5   :  { %v301_v20 = vsel %vm921_vm7, %v288_v17, 0.0  ;;  %v302_v21 = vsel %vm925_vm8, %v289_v18, 0.0  ;;  %503 = vmatpush1.bf16.msra.mxu1 %v428_v8  ;;  %v407_v22 = vld [vmem:[#allocation2 + $0xa8] sm:$0xff]  ;;  %v406_v23 = vld [vmem:[#allocation2 + $0xa0] sm:$0xff] }
  0xd6   :  { %303 = vst [vmem:[#allocation2 + $0xc0] sm:$0xf] %v301_v20  ;;  %304 = vst [vmem:[#allocation2 + $0xc8] sm:$0xf] %v302_v21  ;;  %v431_v24 = vpack.c.bf16 %v407_v22, %v403_v14  ;;  %v430_v25 = vpack.c.bf16 %v406_v23, %v402_v15 }
  0xd7   :  { %v308_v28 = vpop.permute.xlu1 %307  ;;  %v306_v29 = vpop.permute.xlu0 %305 }
  0xd8   :  { %v309_v32 = vsel %vm287_vm6, %v306_v29, %v308_v28  ;;  %v310_v33 = vsel %vm287_vm6, %v308_v28, %v306_v29  ;;  %463 = vmatprep.subr.bf16.mxu0 %v431_v24 }
  0xd9   :  { %v311_v34 = vsel %vm921_vm7, %v309_v32, 0.0  ;;  %v312_v35 = vsel %vm925_vm8, %v310_v33, 0.0  ;;  %464 = vmatpush1.bf16.msra.mxu0 %v430_v25  ;;  %v409_v36 = vld [vmem:[#allocation2 + $0xb8] sm:$0xff]  ;;  %v408_v37 = vld [vmem:[#allocation2 + $0xb0] sm:$0xff] }
  0xda   :  { %313 = vst [vmem:[#allocation2 + $0xd0] sm:$0xf] %v311_v34  ;;  %314 = vst [vmem:[#allocation2 + $0xd8] sm:$0xf] %v312_v35  ;;  %v433_v40 = vpack.c.bf16 %v409_v36, %v405_v30  ;;  %v432_v41 = vpack.c.bf16 %v408_v37, %v404_v31  ;;  %v385_v25 = vld [vmem:[#allocation6] sm:$0xf] }
  0xdb   :  { %v321_v42 = vpop.permute.xlu1 %320  ;;  %v319_v43 = vpop.permute.xlu0 %318 }
  0xdc   :  { %v323_v45 = vsel %vm322_vm10, %v319_v43, %v321_v42  ;;  %v324_v46 = vsel %vm322_vm10, %v321_v42, %v319_v43  ;;  %504 = vmatprep.subr.bf16.mxu1 %v433_v40 }
  0xdd   :  { %v336_v47 = vsel %vm950_vm11, %v323_v45, 0.0  ;;  %v337_v48 = vsel %vm954_vm12, %v324_v46, 0.0  ;;  %505 = vmatpush1.bf16.msra.mxu1 %v432_v41  ;;  %v411_v60 = vld [vmem:[#allocation2 + $0xc8] sm:$0xff]  ;;  %v410_v0 = vld [vmem:[#allocation2 + $0xc0] sm:$0xff] }
  0xde   :  { %338 = vst [vmem:[#allocation2 + $0xe0] sm:$0xf] %v336_v47  ;;  %339 = vst [vmem:[#allocation2 + $0xe8] sm:$0xf] %v337_v48 }
  0xdf   :  { %v343_v50 = vpop.permute.xlu1 %342  ;;  %v341_v51 = vpop.permute.xlu0 %340 }
  0xe0   :  { %v344_v52 = vsel %vm322_vm10, %v341_v51, %v343_v50  ;;  %v345_v53 = vsel %vm322_vm10, %v343_v50, %v341_v51 }
  0xe1   :  { %v346_v54 = vsel %vm950_vm11, %v344_v52, 0.0  ;;  %v347_v55 = vsel %vm954_vm12, %v345_v53, 0.0  ;;  %v413_v9 = vld [vmem:[#allocation2 + $0xd8] sm:$0xff]  ;;  %v412_v16 = vld [vmem:[#allocation2 + $0xd0] sm:$0xff] }
  0xe2   :  { %348 = vst [vmem:[#allocation2 + $0xf0] sm:$0xf] %v346_v54  ;;  %349 = vst [vmem:[#allocation2 + $0xf8] sm:$0xf] %v347_v55 }
  0xe3   :  { %v356_v56 = vpop.permute.xlu1 %355  ;;  %v354_v57 = vpop.permute.xlu0 %353 }
  0xe4   :  { %v358_v58 = vsel %vm357_vm13, %v354_v57, %v356_v56  ;;  %v359_v59 = vsel %vm357_vm13, %v356_v56, %v354_v57 }
  0xe5   :  { %v371_v61 = vsel %vm978_vm14, %v358_v58, 0.0  ;;  %v372_v62 = vsel %vm982_vm15, %v359_v59, 0.0  ;;  %v415_v63 = vld [vmem:[#allocation2 + $0xe8] sm:$0xff]  ;;  %v414_v2 = vld [vmem:[#allocation2 + $0xe0] sm:$0xff] }
  0xe6   :  { %373 = vst [vmem:[#allocation2 + $0x100] sm:$0xf] %v371_v61  ;;  %374 = vst [vmem:[#allocation2 + $0x108] sm:$0xf] %v372_v62  ;;  %v435_v3 = vpack.c.bf16 %v415_v63, %v411_v60  ;;  %v434_v4 = vpack.c.bf16 %v414_v2, %v410_v0 }
  0xe7   :  { %v378_v5 = vpop.permute.xlu1 %377  ;;  %v376_v6 = vpop.permute.xlu0 %375 }
  0xe8   :  { %v379_v7 = vsel %vm357_vm13, %v376_v6, %v378_v5  ;;  %v380_v8 = vsel %vm357_vm13, %v378_v5, %v376_v6  ;;  %465 = vmatprep.subr.bf16.mxu0 %v435_v3 }
  0xe9   :  { %v381_v12 = vsel %vm978_vm14, %v379_v7, 0.0  ;;  %v382_v14 = vsel %vm982_vm15, %v380_v8, 0.0  ;;  %466 = vmatpush1.bf16.msra.mxu0 %v434_v4  ;;  %v417_v15 = vld [vmem:[#allocation2 + $0xf8] sm:$0xff]  ;;  %v416_v17 = vld [vmem:[#allocation2 + $0xf0] sm:$0xff] }
  0xea   :  { %383 = vst [vmem:[#allocation2 + $0x110] sm:$0xf] %v381_v12  ;;  %384 = vst [vmem:[#allocation2 + $0x118] sm:$0xf] %v382_v14  ;;  %v437_v18 = vpack.c.bf16 %v417_v15, %v413_v9  ;;  %v436_v19 = vpack.c.bf16 %v416_v17, %v412_v16 }
  0xec   :  { %506 = vmatprep.subr.bf16.mxu1 %v437_v18 }
  0xed   :  { %507 = vmatpush1.bf16.msra.mxu1 %v436_v19  ;;  %v419_v13 = vld [vmem:[#allocation2 + $0x108] sm:$0xff]  ;;  %v418_v20 = vld [vmem:[#allocation2 + $0x100] sm:$0xff] }
  0xee   :  { %v439_v21 = vpack.c.bf16 %v419_v13, %v419_v13  ;;  %v438_v22 = vpack.c.bf16 %v418_v20, %v418_v20 }
  0xf0   :  { %564 = vmatprep.subr.msk.bf16.mxu0 %vm446_vm0, %v439_v21  ;;  %v448_v23 = vsel %vm446_vm0, %v438_v22, 0 }
  0xf1   :  { %468 = vmatpush1.bf16.msra.mxu0 %v448_v23  ;;  %v421_v24 = vld [vmem:[#allocation2 + $0x118] sm:$0xff]  ;;  %v420_v26 = vld [vmem:[#allocation2 + $0x110] sm:$0xff] }
  0xf2   :  { %v441_v27 = vpack.c.bf16 %v421_v24, %v421_v24  ;;  %v440_v28 = vpack.c.bf16 %v420_v26, %v420_v26 }
  0xf4   :  { %566 = vmatprep.subr.msk.bf16.mxu1 %vm446_vm0, %v441_v27  ;;  %565 = vmatmul.mubr.msk.bf16.vlgmr.msra.gmra.mrb[0].mxu0 %vm442_vm1, %v385_v25  ;;  %v454_v29 = vsel %vm446_vm0, %v440_v28, 0 }
  0xf5   :  { %509 = vmatpush1.bf16.msra.mxu1 %v454_v29 }
  0xf8   :  { %567 = vmatmul.mubr.msk.bf16.vlgmr.msra.gmra.mrb[0].mxu1 %vm442_vm1, %v385_v25 }
 0x1c7   :  { %v493_v30 = vpop.f32.mrb[0].mxu0 }
 0x1c8   :  { %541 = vst [vmem:[#allocation9] sm:$0xff] %v493_v30  ;;  %v495_v31 = vpop.f32.mrb[1].mxu0 }
 0x1c9   :  { %542 = vst [vmem:[#allocation9 + $0x8] sm:$0xff] %v495_v31  ;;  %v497_v32 = vpop.f32.mrb[2].mxu0 }
 0x1ca   :  { %v498_v33 = vpop.f32.mrb[3].mxu0 }
 0x1cb   :  { %v534_v34 = vpop.f32.mrb[0].mxu1 }
 0x1cc   :  { %544 = vst [vmem:[#allocation9 + $0x10] sm:$0xff] %v534_v34  ;;  %v536_v35 = vpop.f32.mrb[1].mxu1 }
 0x1cd   :  { %545 = vst [vmem:[#allocation9 + $0x18] sm:$0xff] %v536_v35  ;;  %v538_v36 = vpop.f32.mrb[2].mxu1 }
 0x1ce   :  { %v539_v37 = vpop.f32.mrb[3].mxu1 }
 0x1cf   :  { %664 = shalt.err (!%p661_p0)
}
 0x1d0   :  { %s665_s1 = scalar_lea.hbm %s1020_s3, 512 }
 0x1d1   :  { %p666_p1 = scmp.ne.s32.totalorder %s1020_s3, %s665_s1  ;;  %p669_p2 = scmp.lt.u32.totalorder %s665_s1, %s1020_s3 }
 0x1d3   :  { %p671_p3 = pnand %p669_p2, %p666_p1 }
 0x1d5   :  { %674 = shalt.err (!%p671_p3)
}
 0x1d6   :  { %557 = dma.vmem_to_hbm [thread:$0]  %s552_s30, 512, %s1020_s3, [#allocation5], %s686_s0, %s686_s0, %s687_s15  }
 0x1d7   :  { %679 = dma.done.wait [#allocation5], 512  }
 0x1d8   :  { %680 = vsyncadd [#allocation5], 4294966784 }
 0x1d9   :  { %561 = vsyncpa [#allocation4], 1 }
 0x1da   :  { %562 = vsyncpa [#allocation7], 1 }
 0x1db   :  { %563 = vsyncpa [#allocation5], 1 }

</bundles_post_ra>
